<compile_context>
chip_gen: v7x
topology: tpu7x:2x2x1
jax: 0.10.0
libtpu: 0.0.40
codegen_flags: <defaults>
</compile_context>

<pallas_src>
import functools

import jax
import jax.numpy as jnp
from jax.experimental import pallas as pl
from jax.experimental.pallas import tpu as pltpu

ALPHA = 1.0
GAMMA = 2.0


def _round_up(x: int, m: int) -> int:
    return ((x + m - 1) // m) * m


def focal_loss_kernel(logits_ref, targets_ref, out_ref, acc_ref, *, n_valid: int):
    i = pl.program_id(0)
    n_tiles = pl.num_programs(0)

    @pl.when(i == 0)
    def _():
        acc_ref[...] = jnp.zeros_like(acc_ref)

    logits = logits_ref[...].astype(jnp.float32)        # (TILE_N, C) f32
    targets = targets_ref[...]                           # (TILE_N, 1) int32
    tn, c = logits.shape

    # --- numerically-stable log-softmax cross entropy, all in (TILE_N, 1) ------
    row_max = jnp.max(logits, axis=-1, keepdims=True)                       # (TILE_N, 1)
    shifted = logits - row_max                                              # (TILE_N, C)
    lse = row_max + jnp.log(jnp.sum(jnp.exp(shifted), axis=-1, keepdims=True))  # (TILE_N, 1)

    # one-hot pick of the target logit (avoids cross-lane gather; stays on VPU+XLU)
    col_ids = jax.lax.broadcasted_iota(jnp.int32, (tn, c), dimension=1)     # (TILE_N, C)
    onehot = (col_ids == targets).astype(jnp.float32)                        # (TILE_N, C)
    target_logit = jnp.sum(onehot * logits, axis=-1, keepdims=True)          # (TILE_N, 1)

    per_row_ce = lse - target_logit                                          # (TILE_N, 1)

    # mask rows that are only padding (batch padded to a multiple of TILE_N)
    row_ids = jax.lax.broadcasted_iota(jnp.int32, (tn, 1), dimension=0) + i * tn
    valid = (row_ids < n_valid).astype(jnp.float32)                          # (TILE_N, 1)

    acc_ref[...] += jnp.sum(per_row_ce * valid, axis=0, keepdims=True)       # (1, 1)

    # --- finalize: mean + focal transform, single scalar store at the end ------
    @pl.when(i == n_tiles - 1)
    def _():
        bce = acc_ref[...] * jnp.float32(1.0 / n_valid)                      # (1, 1)
        pt = jnp.exp(-bce)
        f_loss = jnp.float32(ALPHA) * (1.0 - pt) ** jnp.float32(GAMMA) * bce
        out_ref[...] = f_loss.astype(out_ref.dtype)


def focal_loss(inputs, targets, *, tile_n: int = 512):
    """inputs: (N, C) float32/bfloat16 logits; targets: (N,) int class ids -> () float32."""
    n, c = inputs.shape

    # Tile size: multiple of 8 sublanes, capped so 2 inputs x 2 buffers x tile bytes
    # stays well inside the scoped-VMEM budget on every generation (incl. v7x).
    tn = min(tile_n, _round_up(n, 8))
    n_pad = _round_up(n, tn)
    num_tiles = n_pad // tn

    if n_pad != n:
        inputs = jnp.pad(inputs, ((0, n_pad - n), (0, 0)))
        targets = jnp.pad(targets, ((0, n_pad - n),))
    targets2d = targets.reshape(n_pad, 1).astype(jnp.int32)

    kernel = functools.partial(focal_loss_kernel, n_valid=n)

    out = pl.pallas_call(
        kernel,
        out_shape=jax.ShapeDtypeStruct((1, 1), jnp.float32),
        grid=(num_tiles,),
        in_specs=[
            pl.BlockSpec((tn, c), lambda i: (i, 0)),
            pl.BlockSpec((tn, 1), lambda i: (i, 0)),
        ],
        out_specs=pl.BlockSpec((1, 1), lambda i: (0, 0)),
        scratch_shapes=[pltpu.VMEM((1, 1), jnp.float32)],
        compiler_params=pltpu.CompilerParams(
            dimension_semantics=("arbitrary",),  # batch axis is a reduction
        ),
        cost_estimate=pl.CostEstimate(
            flops=5 * n * c,
            transcendentals=n * c + n,
            bytes_accessed=n * c * inputs.dtype.itemsize + n * 4 + 4,
        ),
    )(inputs, targets2d)
    return out[0, 0]


def focal_loss_ref(inputs, targets):
    # pure-JAX reference for sanity
    logits = inputs.astype(jnp.float32)
    lse = jax.scipy.special.logsumexp(logits, axis=-1)
    tgt = jnp.take_along_axis(logits, targets[:, None].astype(jnp.int32), axis=-1)[:, 0]
    bce = jnp.mean(lse - tgt)
    pt = jnp.exp(-bce)
    return ALPHA * (1.0 - pt) ** GAMMA * bce


if __name__ == "__main__":
    key = jax.random.PRNGKey(0)
    k1, k2 = jax.random.split(key)

    N, C = 8, 32  # small shapes: batch=8, num_classes=32
    inputs = jax.random.normal(k1, (N, C), dtype=jnp.float32)
    targets = jax.random.randint(k2, (N,), 0, C, dtype=jnp.int32)

    out = focal_loss(inputs, targets)
    jax.block_until_ready(out)

    ref = focal_loss_ref(inputs, targets)
    assert jnp.allclose(out, ref, atol=1e-5, rtol=1e-5), (out, ref)

    # also exercise a batch that is NOT a multiple of the tile (padding/mask path)
    N2 = 13
    inputs2 = jax.random.normal(k1, (N2, C), dtype=jnp.float32)
    targets2 = jax.random.randint(k2, (N2,), 0, C, dtype=jnp.int32)
    out2 = focal_loss(inputs2, targets2)
    jax.block_until_ready(out2)
    ref2 = focal_loss_ref(inputs2, targets2)
    assert jnp.allclose(out2, ref2, atol=1e-5, rtol=1e-5), (out2, ref2)

    print("KERNEL_OK")
</pallas_src>

<mosaic_0001>
module attributes {stable_mosaic.version = 11 : i64} {
  func.func @focal_loss_kernel(%arg0: i32, %arg1: memref<8x32xf32, #tpu.memory_space<vmem>>, %arg2: memref<8x1xi32, #tpu.memory_space<vmem>>, %arg3: memref<1x1xf32, #tpu.memory_space<vmem>>, %arg4: memref<1x1xf32, #tpu.memory_space<vmem>>) attributes {dimension_semantics = [#tpu.dimension_semantics<arbitrary>], iteration_bounds = array<i64: 1>, scalar_prefetch = 0 : i64, scratch_operands = 1 : i64, tpu.core_type = #tpu.core_type<tc>, window_params = [{transform_indices = @transform_0, window_bounds = array<i64: 8, 32>}, {transform_indices = @transform_1, window_bounds = array<i64: 8, 1>}, {pipeline_mode = #tpu.pipeline_mode<synchronous>, transform_indices = @transform_2, window_bounds = array<i64: 1, 1>}]} {
    %c0_i32 = arith.constant 0 : i32
    %0 = arith.cmpi eq, %arg0, %c0_i32 : i32
    %1 = arith.extui %0 : i1 to i32
    %c0_i32_0 = arith.constant 0 : i32
    %2 = arith.cmpi ne, %1, %c0_i32_0 : i32
    scf.if %2 {
      %cst_14 = arith.constant 0.000000e+00 : f32
      %40 = vector.broadcast %cst_14 : f32 to vector<1x1xf32>
      %c0_15 = arith.constant 0 : index
      %c0_16 = arith.constant 0 : index
      %41 = vector.load %arg4[%c0_15, %c0_16] : memref<1x1xf32, #tpu.memory_space<vmem>>, vector<1x1xf32>
      tpu.vector_store %arg4[%c0_15, %c0_16], %40 {strides = array<i32>} : memref<1x1xf32, #tpu.memory_space<vmem>>, vector<1x1xf32>,
    } else {
    }
    %c0 = arith.constant 0 : index
    %c0_1 = arith.constant 0 : index
    %3 = vector.load %arg1[%c0, %c0_1] : memref<8x32xf32, #tpu.memory_space<vmem>>, vector<8x32xf32>
    %c0_2 = arith.constant 0 : index
    %c0_3 = arith.constant 0 : index
    %4 = vector.load %arg2[%c0_2, %c0_3] : memref<8x1xi32, #tpu.memory_space<vmem>>, vector<8x1xi32>
    %cst = arith.constant dense<0xFF800000> : vector<8xf32>
    %5 = vector.multi_reduction <maximumf>, %3, %cst [1] : vector<8x32xf32> to vector<8xf32>
    %6 = vector.shape_cast %5 : vector<8xf32> to vector<8x1xf32>
    %7 = vector.broadcast %6 : vector<8x1xf32> to vector<8x32xf32>
    %8 = arith.subf %3, %7 : vector<8x32xf32>
    %9 = math.exp %8 : vector<8x32xf32>
    %cst_4 = arith.constant dense<0.000000e+00> : vector<8xf32>
    %10 = vector.multi_reduction <add>, %9, %cst_4 [1] : vector<8x32xf32> to vector<8xf32>
    %11 = vector.shape_cast %10 : vector<8xf32> to vector<8x1xf32>
    %12 = math.log %11 : vector<8x1xf32>
    %13 = arith.addf %6, %12 : vector<8x1xf32>
    %14 = tpu.iota {dimensions = array<i32: 1>} : vector<8x32xi32>
    %15 = vector.broadcast %4 : vector<8x1xi32> to vector<8x32xi32>
    %16 = arith.cmpi eq, %14, %15 : vector<8x32xi32>
    %17 = arith.extui %16 : vector<8x32xi1> to vector<8x32xi32>
    %18 = arith.sitofp %17 : vector<8x32xi32> to vector<8x32xf32>
    %19 = arith.mulf %18, %3 : vector<8x32xf32>
    %cst_5 = arith.constant dense<0.000000e+00> : vector<8xf32>
    %20 = vector.multi_reduction <add>, %19, %cst_5 [1] : vector<8x32xf32> to vector<8xf32>
    %21 = vector.shape_cast %20 : vector<8xf32> to vector<8x1xf32>
    %22 = arith.subf %13, %21 : vector<8x1xf32>
    %23 = tpu.iota {dimensions = array<i32: 0>} : vector<8x1xi32>
    %c8_i32 = arith.constant 8 : i32
    %24 = arith.muli %arg0, %c8_i32 : i32
    %25 = vector.broadcast %24 : i32 to vector<8x1xi32>
    %26 = arith.addi %23, %25 : vector<8x1xi32>
    %c8_i32_6 = arith.constant 8 : i32
    %27 = vector.broadcast %c8_i32_6 : i32 to vector<8x1xi32>
    %28 = arith.cmpi slt, %26, %27 : vector<8x1xi32>
    %29 = arith.extui %28 : vector<8x1xi1> to vector<8x1xi32>
    %30 = arith.sitofp %29 : vector<8x1xi32> to vector<8x1xf32>
    %c0_7 = arith.constant 0 : index
    %c0_8 = arith.constant 0 : index
    %31 = vector.load %arg4[%c0_7, %c0_8] : memref<1x1xf32, #tpu.memory_space<vmem>>, vector<1x1xf32>
    %32 = arith.mulf %22, %30 : vector<8x1xf32>
    %cst_9 = arith.constant dense<0.000000e+00> : vector<1xf32>
    %33 = vector.multi_reduction <add>, %32, %cst_9 [0] : vector<8x1xf32> to vector<1xf32>
    %34 = vector.shape_cast %33 : vector<1xf32> to vector<1x1xf32>
    %35 = arith.addf %31, %34 : vector<1x1xf32>
    %c0_10 = arith.constant 0 : index
    %c0_11 = arith.constant 0 : index
    %36 = vector.load %arg4[%c0_10, %c0_11] : memref<1x1xf32, #tpu.memory_space<vmem>>, vector<1x1xf32>
    tpu.vector_store %arg4[%c0_10, %c0_11], %35 {strides = array<i32>} : memref<1x1xf32, #tpu.memory_space<vmem>>, vector<1x1xf32>,
    %c0_i32_12 = arith.constant 0 : i32
    %37 = arith.cmpi eq, %arg0, %c0_i32_12 : i32
    %38 = arith.extui %37 : i1 to i32
    %c0_i32_13 = arith.constant 0 : i32
    %39 = arith.cmpi ne, %38, %c0_i32_13 : i32
    scf.if %39 {
      %c0_14 = arith.constant 0 : index
      %c0_15 = arith.constant 0 : index
      %40 = vector.load %arg4[%c0_14, %c0_15] : memref<1x1xf32, #tpu.memory_space<vmem>>, vector<1x1xf32>
      %cst_16 = arith.constant 1.250000e-01 : f32
      %41 = vector.broadcast %cst_16 : f32 to vector<1x1xf32>
      %42 = arith.mulf %40, %41 : vector<1x1xf32>
      %cst_17 = arith.constant 0.000000e+00 : f32
      %43 = vector.broadcast %cst_17 : f32 to vector<1x1xf32>
      %44 = arith.subf %43, %42 : vector<1x1xf32>
      %45 = math.exp %44 : vector<1x1xf32>
      %cst_18 = arith.constant 1.000000e+00 : f32
      %46 = vector.broadcast %cst_18 : f32 to vector<1x1xf32>
      %47 = arith.subf %46, %45 : vector<1x1xf32>
      %cst_19 = arith.constant 2.000000e+00 : f32
      %48 = vector.broadcast %cst_19 : f32 to vector<1x1xf32>
      %49 = math.powf %47, %48 : vector<1x1xf32>
      %cst_20 = arith.constant 1.000000e+00 : f32
      %50 = vector.broadcast %cst_20 : f32 to vector<1x1xf32>
      %51 = arith.mulf %50, %49 : vector<1x1xf32>
      %52 = arith.mulf %51, %42 : vector<1x1xf32>
      %c0_21 = arith.constant 0 : index
      %c0_22 = arith.constant 0 : index
      %53 = vector.load %arg3[%c0_21, %c0_22] : memref<1x1xf32, #tpu.memory_space<vmem>>, vector<1x1xf32>
      tpu.vector_store %arg3[%c0_21, %c0_22], %52 {strides = array<i32>} : memref<1x1xf32, #tpu.memory_space<vmem>>, vector<1x1xf32>,
    } else {
    }
    return
  }
  func.func @transform_0(%arg0: i32) -> (i32, i32) {
    %c0_i32 = arith.constant 0 : i32
    %c0_i32_0 = arith.constant 0 : i32
    return %arg0, %c0_i32 : i32, i32
  }
  func.func @transform_1(%arg0: i32) -> (i32, i32) {
    %c0_i32 = arith.constant 0 : i32
    %c0_i32_0 = arith.constant 0 : i32
    return %arg0, %c0_i32 : i32, i32
  }
  func.func @transform_2(%arg0: i32) -> (i32, i32) {
    %c0_i32 = arith.constant 0 : i32
    %c0_i32_0 = arith.constant 0 : i32
    %c0_i32_1 = arith.constant 0 : i32
    return %c0_i32, %c0_i32_0 : i32, i32
  }
}

</mosaic_0001>

<bundles_post_ra>
// kernel: tpu_custom_call.1
= control target key start
LH: loop header
LB: loop body
LE: loop exit
PB: predicated region body
PF: predicated region fallthrough
CT: control target
= control target key end

     0   :  { %vm20_vm0 = vcmask 261120   ;;  %s169_s0 = inlined_call_operand.vmem [shape: f32[8,32], index: 0, kind: input, shape index: {}]   ;;  %s170_s1 = inlined_call_operand.vmem [shape: s32[8,1], index: 1, kind: input, shape index: {}]   ;;  %s171_s2 = inlined_call_operand.hbm [shape: f32[1,1], index: 2, kind: output, shape index: {}]  }
   0x1   :  { %v18_v0 = vld [vmem:[%s169_s0] sm:$0xff] }
   0x2   :  { %7 = vsyncpa [#allocation4], 0  ;;  %v21_v1 = vsel %vm20_vm0, %v18_v0, -inf  ;;  %v127_v2 = vmov 0   ;;  %v19_v3 = vld [vmem:[%s170_s1] sm:$0xff]  ;;  %vm16_vm1 = vcmask 0   ;;  %v33_v7 = vlaneseq }
   0x3   :  { %96 = vset.pattern.permute.xlu0 %v127_v2  ;;  %v128_v4 = vmov 0.0   ;;  %s129_s0 = smov [#allocation3]  }
   0x4   :  { %22 = vmax.xlane.f32.xlu0 %v21_v1  ;;  %17 = vst.msk [vmem:[#allocation2] sm:$0x1] %vm16_vm1, %v128_v4  ;;  %v34_v9 = vand.u32 127, %v33_v7  ;;  %s83_s1 = sshll.u32 %s129_s0, 4  ;;  %s84_s1 = int_to_ptr.vmem [resolvable:$true] %s83_s1 }
   0x5   :  { %s103_s13 = scalar_lea.vmem %s84_s1, 16  ;;  %s107_s14 = scalar_lea.vmem %s84_s1, 32 }
   0x6   :  { %p104_p0 = scmp.ne.s32.totalorder %s84_s1, %s103_s13  ;;  %p108_p1 = scmp.lt.s32.totalorder %s84_s1, %s84_s1 }
   0x7   :  { %p109_p2 = scmp.lt.s32.totalorder %s107_s14, %s103_s13 }
   0x9   :  { %p110_p3 = por %p109_p2, %p108_p1 }
   0xb   :  { %v54_v27 = vld [vmem:[#allocation2] sm:$0x1]  ;;  %p111_p4 = pnand %p110_p3, %p104_p0 }
  0x1a   :  { %36 = vperm.xlu0 %96, %v19_v3  }
  0x91   :  { %v23_v5 = vpop.xlane.xlu0 %22 }
  0x92   :  { %v24_v6 = vsub.f32 %v18_v0, %v23_v5 }
  0x94   :  { %v25_v8 = vmul.f32 1.442695, %v24_v6 }
  0x96   :  { %97 = vpow2.f32 %v25_v8 }
  0x99   :  { %v37_v10 = vpop.permute.xlu0 %36 }
  0x9a   :  { %vm38_vm2 = vcmp.eq.s32.totalorder %v34_v9, %v37_v10 }
  0x9b   :  { %v91_v11 = vsel %vm38_vm2, 1.0, %v128_v4 }
  0x9c   :  { %v41_v12 = vmul.f32 %v91_v11, %v18_v0 }
  0x9e   :  { %v42_v15 = vsel %vm20_vm0, %v41_v12, 0.0 }
  0xa0   :  { %v98_v13 = vpop.eup %97 }
  0xa1   :  { %v27_v14 = vsel %vm20_vm0, %v98_v13, 0.0 }
  0xa2   :  { %28 = vadd.xlane.f32.xlu1 %v27_v14 }
  0xa6   :  { %43 = vadd.xlane.f32.xlu1 %v42_v15 }
 0x12f   :  { %v29_v16 = vpop.xlane.xlu1 %28 }
 0x130   :  { %99 = vlog2.f32 %v29_v16 }
 0x133   :  { %v44_v19 = vpop.xlane.xlu1 %43 }
 0x13a   :  { %v100_v17 = vpop.eup %99 }
 0x13b   :  { %v31_v18 = vmul.f32 0.6931472, %v100_v17 }
 0x13d   :  { %v32_v20 = vadd.f32 %v31_v18, %v23_v5 }
 0x13f   :  { %v45_v21 = vsub.f32 %v32_v20, %v44_v19 }
 0x141   :  { %v56_v22 = vrot.slane %v45_v21, 4 }
 0x143   :  { %v57_v23 = vadd.f32 %v56_v22, %v45_v21 }
 0x145   :  { %v58_v24 = vrot.slane %v57_v23, 2 }
 0x147   :  { %v59_v25 = vadd.f32 %v58_v24, %v57_v23 }
 0x149   :  { %v60_v26 = vrot.slane %v59_v25, 1 }
 0x14b   :  { %v61_v28 = vadd.f32 %v60_v26, %v59_v25 }
 0x14d   :  { %v62_v29 = vadd.f32 %v61_v28, %v54_v27 }
 0x14f   :  { %64 = vst.msk [vmem:[#allocation2] sm:$0x1] %vm16_vm1, %v62_v29 }
 0x156   :  { %v68_v30 = vld [vmem:[#allocation2] sm:$0x1] }
 0x157   :  { %v69_v31 = vmul.f32 0.125, %v68_v30 }
 0x159   :  { %v70_v32 = vsub.f32 0.0, %v69_v31 }
 0x15b   :  { %v71_v33 = vmul.f32 1.442695, %v70_v32 }
 0x15d   :  { %101 = vpow2.f32 %v71_v33 }
 0x167   :  { %v102_v34 = vpop.eup %101 }
 0x168   :  { %v73_v35 = vsub.f32 1.0, %v102_v34 }
 0x16a   :  { %v92_v36 = vmul.f32 %v73_v35, %v73_v35 }
 0x16c   :  { %v75_v37 = vmul.f32 %v92_v36, %v69_v31 }
 0x16e   :  { %76 = vst.msk [vmem:[#allocation3] sm:$0x1] %vm16_vm1, %v75_v37 }
 0x16f   :  { %114 = shalt.err (!%p111_p4)
}
 0x170   :  { %s115_s17 = scalar_lea.hbm %s171_s2, 16 }
 0x171   :  { %p116_p5 = scmp.ne.s32.totalorder %s171_s2, %s115_s17  ;;  %p119_p6 = scmp.lt.u32.totalorder %s115_s17, %s171_s2 }
 0x173   :  { %p121_p7 = pnand %p119_p6, %p116_p5 }
 0x175   :  { %124 = shalt.err (!%p121_p7)
}
 0x176   :  { %86 = dma.vmem_to_hbm [thread:$0]  %s84_s1, 16, %s171_s2, [#allocation4]  }
 0x177   :  { %125 = dma.done.wait [#allocation4], 16  }
 0x178   :  { %126 = vsyncadd [#allocation4], 4294967280 }
 0x179   :  { %90 = vsyncpa [#allocation4], 1 }

</bundles_post_ra>
